<compile_context>
chip_gen: v7x
topology: tpu7x:2x2x1
jax: 0.10.0
libtpu: 0.0.40
codegen_flags: <defaults>
</compile_context>

<pallas_src>
import functools
import math

import jax
import jax.numpy as jnp
from jax.experimental import pallas as pl
from jax.experimental.pallas import tpu as pltpu

# ----------------------------- configuration --------------------------------
BATCH = 2          # batch size
SEQ = 8            # sub-word sequence length
HIDDEN = 32        # transformer hidden size
NUM_HEADS = 2
HEAD_DIM = HIDDEN // NUM_HEADS
FFN = 64           # transformer intermediate size
NUM_LAYERS = 2
VOCAB = 64
TYPE_VOCAB = 2
MAX_POS = 16
WORDS = 4          # number of word-level positions after sub-word pooling
PROJ = 32          # Encoder projection_size (None -> hidden_size in reference)
LN_EPS = 1e-12
SCALE = 1.0 / math.sqrt(HEAD_DIM)
NEG_INF = -1e9


# ------------------------------ shared helpers -------------------------------
def _ln(v, g, b):
    mu = jnp.mean(v, axis=-1, keepdims=True)
    var = jnp.mean(jnp.square(v - mu), axis=-1, keepdims=True)
    return (v - mu) * jax.lax.rsqrt(var + LN_EPS) * g + b


def _bf16(x):
    return x.astype(jnp.bfloat16)


# ------------------------------ fused Pallas kernel --------------------------
def fused_encoder_kernel(x_emb_ref, mask_ref, embln_ref,
                         wqkv_ref, bqkv_ref, wo_ref, bo_ref, ln1_ref,
                         w1_ref, b1_ref, w2_ref, b2_ref, ln2_ref,
                         bpe_ref, projw_ref, projb_ref,
                         out_ref, x_sc):
    """One grid step == one transformer layer; activation resident in VMEM."""
    l = pl.program_id(0)
    R, H = x_emb_ref.shape                      # R = B*S

    # --- layer 0: embedding LayerNorm into the resident activation scratch ---
    @pl.when(l == 0)
    def _():
        x_sc[...] = _ln(x_emb_ref[...], embln_ref[0:1, :], embln_ref[1:2, :])

    x = x_sc[...]                               # [R, H] f32
    xb = _bf16(x)

    # --- self-attention -------------------------------------------------------
    # Fused QKV GEMM: bf16 operands, f32 accumulation on the MXU.
    qkv = (jnp.dot(xb, wqkv_ref[...], preferred_element_type=jnp.float32)
           + bqkv_ref[...])                     # [R, 3H] f32
    mask = mask_ref[...]                        # [R, R] block-diag additive mask

    # Tiny static head loop; scores are a single [R, R] GEMM per head (the
    # block-diagonal mask keeps batches separate).  No concatenates: the output
    # projection is decomposed per head and accumulated in f32.
    attn = jnp.zeros((R, H), jnp.float32)
    for h in range(NUM_HEADS):
        lo = h * HEAD_DIM
        hi = lo + HEAD_DIM
        q_h = _bf16(qkv[:, lo:hi])
        k_h = _bf16(qkv[:, H + lo:H + hi])
        v_h = _bf16(qkv[:, 2 * H + lo:2 * H + hi])

        sc = jnp.einsum('qd,kd->qk', q_h, k_h,
                        preferred_element_type=jnp.float32) * SCALE
        sc = sc + mask
        sc = sc - jnp.max(sc, axis=-1, keepdims=True)
        p = jnp.exp(sc)
        p = p * pl.reciprocal(jnp.sum(p, axis=-1, keepdims=True), approx=True)

        ctx = jnp.dot(_bf16(p), v_h, preferred_element_type=jnp.float32)
        attn = attn + jnp.dot(_bf16(ctx), wo_ref[lo:hi, :],
                              preferred_element_type=jnp.float32)
    attn = attn + bo_ref[...]

    h1 = _ln(x + attn, ln1_ref[0:1, :], ln1_ref[1:2, :])

    # --- feed-forward ----------------------------------------------------------
    ff = (jnp.dot(_bf16(h1), w1_ref[...], preferred_element_type=jnp.float32)
          + b1_ref[...])
    ff = jax.nn.gelu(ff)
    ff = (jnp.dot(_bf16(ff), w2_ref[...], preferred_element_type=jnp.float32)
          + b2_ref[...])
    x_new = _ln(h1 + ff, ln2_ref[0:1, :], ln2_ref[1:2, :])
    x_sc[...] = x_new                           # carry to the next layer

    # --- last layer: fused sub-word merge (merge_sparse) + Encoder projection ---
    @pl.when(l == pl.num_programs(0) - 1)
    def _():
        # block-diagonal dense bpe weights [B*W, B*S] @ last_hidden [B*S, H]
        merged = jnp.dot(bpe_ref[...], x_new, preferred_element_type=jnp.float32)
        # Encoder: Linear(hidden, projection); activation=None, dropout=identity.
        # TODO(synk): training-mode dropout not implemented (would use pltpu.prng_*).
        out_ref[...] = (jnp.dot(_bf16(merged), projw_ref[...],
                                preferred_element_type=jnp.float32)
                        + projb_ref[...])


# ------------------------------ wrapper ---------------------------------------
@functools.partial(jax.jit, static_argnames=("sparse_size",))
def transformers_encoder_forward(params, input_ids, attention_mask, token_type_ids,
                                 sparse_indices, sparse_values, sparse_size):
    B, S = input_ids.shape
    W = sparse_size[1]
    H = HIDDEN
    R = B * S

    # --- embedding lookups (gather glue; LN and the rest run in the kernel) ---
    x_emb = (params['word_emb'][input_ids]
             + params['pos_emb'][jnp.arange(S)][None, :, :]
             + params['type_emb'][token_type_ids]).reshape(R, H)

    # --- combined additive attention mask, block-diagonal over the batch ------
    bid = jnp.repeat(jnp.arange(B, dtype=jnp.int32), S)
    key_valid = attention_mask.reshape(R) > 0
    allowed = (bid[:, None] == bid[None, :]) & key_valid[None, :]
    big_mask = jnp.where(allowed, 0.0, NEG_INF).astype(jnp.float32)   # [R, R]

    # --- sparse COO -> dense block-diagonal bpe weights (merge_sparse glue) ----
    rows = sparse_indices[0] * W + sparse_indices[1]
    cols = sparse_indices[0] * S + sparse_indices[2]
    bpe_block = jnp.zeros((B * W, R), jnp.float32).at[rows, cols].add(sparse_values)

    def full(a):
        return pl.BlockSpec(tuple(a.shape), lambda l, nd=a.ndim: (0,) * nd)

    def per_layer(a):
        return pl.BlockSpec((None,) + tuple(a.shape[1:]),
                            lambda l, nd=a.ndim: (l,) + (0,) * (nd - 1))

    in_arrays = [x_emb, big_mask, params['emb_ln'],
                 params['w_qkv'], params['b_qkv'], params['w_o'], params['b_o'],
                 params['ln1'], params['w1'], params['b1'], params['w2'],
                 params['b2'], params['ln2'],
                 bpe_block, params['proj_w'], params['proj_b']]
    in_specs = [full(x_emb), full(big_mask), full(params['emb_ln']),
                per_layer(params['w_qkv']), per_layer(params['b_qkv']),
                per_layer(params['w_o']), per_layer(params['b_o']),
                per_layer(params['ln1']), per_layer(params['w1']),
                per_layer(params['b1']), per_layer(params['w2']),
                per_layer(params['b2']), per_layer(params['ln2']),
                full(bpe_block), full(params['proj_w']), full(params['proj_b'])]

    out = pl.pallas_call(
        fused_encoder_kernel,
        out_shape=jax.ShapeDtypeStruct((B * W, PROJ), jnp.float32),
        grid_spec=pltpu.PrefetchScalarGridSpec(
            num_scalar_prefetch=0,
            grid=(NUM_LAYERS,),
            in_specs=in_specs,
            out_specs=pl.BlockSpec((B * W, PROJ), lambda l: (0, 0)),
            scratch_shapes=[pltpu.VMEM((R, H), jnp.float32)]),
        compiler_params=pltpu.CompilerParams(
            dimension_semantics=("arbitrary",)),
    )(*in_arrays)
    return out.reshape(B, W, PROJ)


# --------------------------- parameter initialization ------------------------
def init_params(key):
    keys = iter(jax.random.split(key, 16))

    def nrm(shape, dtype=jnp.float32):
        return (jax.random.normal(next(keys), shape, jnp.float32) * 0.02).astype(dtype)

    ln_row = jnp.stack([jnp.ones((HIDDEN,), jnp.float32),
                        jnp.zeros((HIDDEN,), jnp.float32)])            # [2, H]
    ln_stack = jnp.tile(ln_row[None], (NUM_LAYERS, 1, 1))              # [L, 2, H]

    return {
        'word_emb': nrm((VOCAB, HIDDEN)),
        'pos_emb': nrm((MAX_POS, HIDDEN)),
        'type_emb': nrm((TYPE_VOCAB, HIDDEN)),
        'emb_ln': ln_row,
        # GEMM weights stored in bf16 (f32 accumulation in the kernel);
        # biases / LN params stay f32.
        'w_qkv': nrm((NUM_LAYERS, HIDDEN, 3 * HIDDEN), jnp.bfloat16),
        'b_qkv': nrm((NUM_LAYERS, 1, 3 * HIDDEN)),
        'w_o': nrm((NUM_LAYERS, HIDDEN, HIDDEN), jnp.bfloat16),
        'b_o': nrm((NUM_LAYERS, 1, HIDDEN)),
        'ln1': ln_stack,
        'w1': nrm((NUM_LAYERS, HIDDEN, FFN), jnp.bfloat16),
        'b1': nrm((NUM_LAYERS, 1, FFN)),
        'w2': nrm((NUM_LAYERS, FFN, HIDDEN), jnp.bfloat16),
        'b2': nrm((NUM_LAYERS, 1, HIDDEN)),
        'ln2': ln_stack,
        'proj_w': nrm((HIDDEN, PROJ), jnp.bfloat16),
        'proj_b': nrm((1, PROJ)),
    }


# --------------------------- pure-JAX reference ------------------------------
def reference_forward(params, input_ids, attention_mask, token_type_ids,
                      sparse_indices, sparse_values, sparse_size):
    B, S = input_ids.shape
    x = (params['word_emb'][input_ids]
         + params['pos_emb'][jnp.arange(S)][None, :, :]
         + params['type_emb'][token_type_ids])                        # [B, S, H]
    x = _ln(x, params['emb_ln'][0], params['emb_ln'][1])
    add_mask = (1.0 - attention_mask.astype(jnp.float32)) * -NEG_INF * -1.0  # [B, S]
    add_mask = (1.0 - attention_mask.astype(jnp.float32)) * NEG_INF

    for l in range(NUM_LAYERS):
        qkv = (jnp.einsum('bsh,hk->bsk', _bf16(x), params['w_qkv'][l],
                          preferred_element_type=jnp.float32)
               + params['b_qkv'][l][0])
        q = qkv[..., :HIDDEN].reshape(B, S, NUM_HEADS, HEAD_DIM)
        k = qkv[..., HIDDEN:2 * HIDDEN].reshape(B, S, NUM_HEADS, HEAD_DIM)
        v = qkv[..., 2 * HIDDEN:].reshape(B, S, NUM_HEADS, HEAD_DIM)
        sc = jnp.einsum('bqhd,bkhd->bhqk', _bf16(q), _bf16(k),
                        preferred_element_type=jnp.float32) * SCALE
        sc = sc + add_mask[:, None, None, :]
        p = jax.nn.softmax(sc, axis=-1)
        ctx = jnp.einsum('bhqk,bkhd->bqhd', _bf16(p), _bf16(v),
                         preferred_element_type=jnp.float32).reshape(B, S, HIDDEN)
        attn = (jnp.einsum('bsh,hk->bsk', _bf16(ctx), params['w_o'][l],
                           preferred_element_type=jnp.float32)
                + params['b_o'][l][0])
        h1 = _ln(x + attn, params['ln1'][l][0], params['ln1'][l][1])
        ff = (jnp.einsum('bsh,hk->bsk', _bf16(h1), params['w1'][l],
                         preferred_element_type=jnp.float32)
              + params['b1'][l][0])
        ff = jax.nn.gelu(ff)
        ff = (jnp.einsum('bsh,hk->bsk', _bf16(ff), params['w2'][l],
                         preferred_element_type=jnp.float32)
              + params['b2'][l][0])
        x = _ln(h1 + ff, params['ln2'][l][0], params['ln2'][l][1])

    bpe = jnp.zeros(tuple(sparse_size), jnp.float32).at[
        sparse_indices[0], sparse_indices[1], sparse_indices[2]].add(sparse_values)
    merged = jnp.einsum('bws,bsh->bwh', bpe, x)                       # f32 merge
    return (jnp.einsum('bwh,hp->bwp', _bf16(merged), params['proj_w'],
                       preferred_element_type=jnp.float32)
            + params['proj_b'][0])


# ----------------------------------- main ------------------------------------
if __name__ == "__main__":
    key = jax.random.PRNGKey(0)
    pkey, ikey = jax.random.split(key)
    params = init_params(pkey)

    input_ids = jax.random.randint(ikey, (BATCH, SEQ), 0, VOCAB, dtype=jnp.int32)
    attention_mask = jnp.ones((BATCH, SEQ), jnp.int32)
    token_type_ids = jnp.zeros((BATCH, SEQ), jnp.int32)

    # Deterministic sub-word -> word mapping (the sparse_offsets of merge_sparse):
    word_ids = jnp.array([[0, 0, 1, 2, 2, 2, 3, 3],
                          [0, 1, 1, 2, 3, 3, 3, 3]], dtype=jnp.int32)
    b_idx = jnp.repeat(jnp.arange(BATCH, dtype=jnp.int32), SEQ)
    s_idx = jnp.tile(jnp.arange(SEQ, dtype=jnp.int32), BATCH)
    w_idx = word_ids.reshape(-1)
    counts = jnp.zeros((BATCH, WORDS), jnp.float32).at[b_idx, w_idx].add(1.0)
    sparse_values = 1.0 / counts[b_idx, w_idx]                  # mean-pooling weights
    sparse_indices = jnp.stack([b_idx, w_idx, s_idx], axis=0)   # [3, nnz]
    sparse_size = (BATCH, WORDS, SEQ)

    out = transformers_encoder_forward(params, input_ids, attention_mask,
                                       token_type_ids, sparse_indices,
                                       sparse_values, sparse_size=sparse_size)
    out = jax.block_until_ready(out)

    ref = reference_forward(params, input_ids, attention_mask, token_type_ids,
                            sparse_indices, sparse_values, sparse_size)
    ref = jax.block_until_ready(ref)

    assert out.shape == (BATCH, WORDS, PROJ), out.shape
    err = float(jnp.max(jnp.abs(out - ref)))
    assert err < 5e-3, err   # only asymmetry vs ref is the approx softmax reciprocal
    print("KERNEL_OK")
</pallas_src>

<mosaic_0001>
module attributes {stable_mosaic.version = 11 : i64} {
  func.func private @main(%arg0: i32) attributes {dimension_semantics = [#tpu.dimension_semantics<core_parallel>], iteration_bounds = array<i64: 2>, tpu.core_type = #tpu.core_type<sc_scalar_subcore>, window_params = []} {
    return
  }
}

module attributes {stable_mosaic.version = 11 : i64} {
  func.func private @main(%arg0: i32) attributes {dimension_semantics = [#tpu.dimension_semantics<core_parallel>], iteration_bounds = array<i64: 2>, tpu.core_type = #tpu.core_type<sc_scalar_subcore>, window_params = []} {
    return
  }
}

module attributes {stable_mosaic.version = 11 : i64} {
  func.func @fused_encoder_kernel(%arg0: i32, %arg1: memref<16x32xf32, #tpu.memory_space<vmem>>, %arg2: memref<16x16xf32, #tpu.memory_space<vmem>>, %arg3: memref<2x32xf32, #tpu.memory_space<vmem>>, %arg4: memref<1x32x96xbf16, #tpu.memory_space<vmem>>, %arg5: memref<1x1x96xf32, #tpu.memory_space<vmem>>, %arg6: memref<1x32x32xbf16, #tpu.memory_space<vmem>>, %arg7: memref<1x1x32xf32, #tpu.memory_space<vmem>>, %arg8: memref<1x2x32xf32, #tpu.memory_space<vmem>>, %arg9: memref<1x32x64xbf16, #tpu.memory_space<vmem>>, %arg10: memref<1x1x64xf32, #tpu.memory_space<vmem>>, %arg11: memref<1x64x32xbf16, #tpu.memory_space<vmem>>, %arg12: memref<1x1x32xf32, #tpu.memory_space<vmem>>, %arg13: memref<1x2x32xf32, #tpu.memory_space<vmem>>, %arg14: memref<8x16xf32, #tpu.memory_space<vmem>>, %arg15: memref<32x32xbf16, #tpu.memory_space<vmem>>, %arg16: memref<1x32xf32, #tpu.memory_space<vmem>>, %arg17: memref<8x32xf32, #tpu.memory_space<vmem>>, %arg18: memref<16x32xf32, #tpu.memory_space<vmem>>) attributes {dimension_semantics = [#tpu.dimension_semantics<arbitrary>], iteration_bounds = array<i64: 2>, scalar_prefetch = 0 : i64, scratch_operands = 1 : i64, tpu.core_type = #tpu.core_type<tc>, window_params = [{pipeline_mode = #tpu.pipeline_mode<synchronous>, transform_indices = @transform_0, window_bounds = array<i64: 16, 32>}, {pipeline_mode = #tpu.pipeline_mode<synchronous>, transform_indices = @transform_1, window_bounds = array<i64: 16, 16>}, {pipeline_mode = #tpu.pipeline_mode<synchronous>, transform_indices = @transform_2, window_bounds = array<i64: 2, 32>}, {transform_indices = @transform_3, window_bounds = array<i64: 1, 32, 96>}, {transform_indices = @transform_4, window_bounds = array<i64: 1, 1, 96>}, {transform_indices = @transform_5, window_bounds = array<i64: 1, 32, 32>}, {transform_indices = @transform_6, window_bounds = array<i64: 1, 1, 32>}, {transform_indices = @transform_7, window_bounds = array<i64: 1, 2, 32>}, {transform_indices = @transform_8, window_bounds = array<i64: 1, 32, 64>}, {transform_indices = @transform_9, window_bounds = array<i64: 1, 1, 64>}, {transform_indices = @transform_10, window_bounds = array<i64: 1, 64, 32>}, {transform_indices = @transform_11, window_bounds = array<i64: 1, 1, 32>}, {transform_indices = @transform_12, window_bounds = array<i64: 1, 2, 32>}, {pipeline_mode = #tpu.pipeline_mode<synchronous>, transform_indices = @transform_13, window_bounds = array<i64: 8, 16>}, {pipeline_mode = #tpu.pipeline_mode<synchronous>, transform_indices = @transform_14, window_bounds = array<i64: 32, 32>}, {pipeline_mode = #tpu.pipeline_mode<synchronous>, transform_indices = @transform_15, window_bounds = array<i64: 1, 32>}, {pipeline_mode = #tpu.pipeline_mode<synchronous>, transform_indices = @transform_16, window_bounds = array<i64: 8, 32>}]} {
    %c0_i32 = arith.constant 0 : i32
    %0 = arith.cmpi eq, %arg0, %c0_i32 : i32
    %1 = arith.extui %0 : i1 to i32
    %c0_i32_0 = arith.constant 0 : i32
    %2 = arith.cmpi ne, %1, %c0_i32_0 : i32
    scf.if %2 {
      %c0_73 = arith.constant 0 : index
      %c0_74 = arith.constant 0 : index
      %159 = vector.load %arg1[%c0_73, %c0_74] : memref<16x32xf32, #tpu.memory_space<vmem>>, vector<16x32xf32>
      %c0_75 = arith.constant 0 : index
      %c0_76 = arith.constant 0 : index
      %160 = vector.load %arg3[%c0_75, %c0_76] : memref<2x32xf32, #tpu.memory_space<vmem>>, vector<1x32xf32>
      %c1_77 = arith.constant 1 : index
      %c0_78 = arith.constant 0 : index
      %161 = vector.load %arg3[%c1_77, %c0_78] : memref<2x32xf32, #tpu.memory_space<vmem>>, vector<1x32xf32>
      %cst_79 = arith.constant dense<0.000000e+00> : vector<16xf32>
      %162 = vector.multi_reduction <add>, %159, %cst_79 [1] : vector<16x32xf32> to vector<16xf32>
      %163 = vector.shape_cast %162 : vector<16xf32> to vector<16x1xf32>
      %cst_80 = arith.constant 3.200000e+01 : f32
      %164 = vector.broadcast %cst_80 : f32 to vector<16x1xf32>
      %165 = arith.divf %163, %164 : vector<16x1xf32>
      %166 = vector.broadcast %165 : vector<16x1xf32> to vector<16x32xf32>
      %167 = arith.subf %159, %166 : vector<16x32xf32>
      %168 = arith.mulf %167, %167 : vector<16x32xf32>
      %cst_81 = arith.constant dense<0.000000e+00> : vector<16xf32>
      %169 = vector.multi_reduction <add>, %168, %cst_81 [1] : vector<16x32xf32> to vector<16xf32>
      %170 = vector.shape_cast %169 : vector<16xf32> to vector<16x1xf32>
      %cst_82 = arith.constant 3.200000e+01 : f32
      %171 = vector.broadcast %cst_82 : f32 to vector<16x1xf32>
      %172 = arith.divf %170, %171 : vector<16x1xf32>
      %173 = vector.broadcast %165 : vector<16x1xf32> to vector<16x32xf32>
      %174 = arith.subf %159, %173 : vector<16x32xf32>
      %cst_83 = arith.constant 9.99999996E-13 : f32
      %175 = vector.broadcast %cst_83 : f32 to vector<16x1xf32>
      %176 = arith.addf %172, %175 : vector<16x1xf32>
      %177 = math.rsqrt %176 : vector<16x1xf32>
      %178 = vector.broadcast %177 : vector<16x1xf32> to vector<16x32xf32>
      %179 = arith.mulf %174, %178 : vector<16x32xf32>
      %180 = vector.broadcast %160 : vector<1x32xf32> to vector<16x32xf32>
      %181 = arith.mulf %179, %180 : vector<16x32xf32>
      %182 = vector.broadcast %161 : vector<1x32xf32> to vector<16x32xf32>
      %183 = arith.addf %181, %182 : vector<16x32xf32>
      %c0_84 = arith.constant 0 : index
      %c0_85 = arith.constant 0 : index
      %184 = vector.load %arg18[%c0_84, %c0_85] : memref<16x32xf32, #tpu.memory_space<vmem>>, vector<16x32xf32>
      tpu.vector_store %arg18[%c0_84, %c0_85], %183 {strides = array<i32>} : memref<16x32xf32, #tpu.memory_space<vmem>>, vector<16x32xf32>,
    } else {
    }
    %c0 = arith.constant 0 : index
    %c0_1 = arith.constant 0 : index
    %3 = vector.load %arg18[%c0, %c0_1] : memref<16x32xf32, #tpu.memory_space<vmem>>, vector<16x32xf32>
    %4 = arith.truncf %3 : vector<16x32xf32> to vector<16x32xbf16>
    %c0_2 = arith.constant 0 : index
    %c0_3 = arith.constant 0 : index
    %c0_4 = arith.constant 0 : index
    %5 = vector.load %arg4[%c0_2, %c0_3, %c0_4] : memref<1x32x96xbf16, #tpu.memory_space<vmem>>, vector<1x32x96xbf16>
    %6 = vector.shape_cast %5 : vector<1x32x96xbf16> to vector<32x96xbf16>
    %cst = arith.constant dense<0.000000e+00> : vector<16x96xf32>
    %7 = tpu.matmul %4, %6, %cst {dimension_numbers = #tpu.dot_dimension_numbers<[1], [0], [0], [1], [0, 0, 1, 1], [], []>} : vector<16x32xbf16>, vector<32x96xbf16>, vector<16x96xf32> -> vector<16x96xf32>
    %c0_5 = arith.constant 0 : index
    %c0_6 = arith.constant 0 : index
    %c0_7 = arith.constant 0 : index
    %8 = vector.load %arg5[%c0_5, %c0_6, %c0_7] : memref<1x1x96xf32, #tpu.memory_space<vmem>>, vector<1x1x96xf32>
    %9 = vector.shape_cast %8 : vector<1x1x96xf32> to vector<1x96xf32>
    %10 = vector.broadcast %9 : vector<1x96xf32> to vector<16x96xf32>
    %11 = arith.addf %7, %10 : vector<16x96xf32>
    %c0_8 = arith.constant 0 : index
    %c0_9 = arith.constant 0 : index
    %12 = vector.load %arg2[%c0_8, %c0_9] : memref<16x16xf32, #tpu.memory_space<vmem>>, vector<16x16xf32>
    %cst_10 = arith.constant 0.000000e+00 : f32
    %13 = vector.broadcast %cst_10 : f32 to vector<16x32xf32>
    %14 = vector.extract_strided_slice %11 {offsets = [0, 0], sizes = [16, 16], strides = [1, 1]} : vector<16x96xf32> to vector<16x16xf32>
    %15 = arith.truncf %14 : vector<16x16xf32> to vector<16x16xbf16>
    %16 = vector.extract_strided_slice %11 {offsets = [0, 32], sizes = [16, 16], strides = [1, 1]} : vector<16x96xf32> to vector<16x16xf32>
    %17 = arith.truncf %16 : vector<16x16xf32> to vector<16x16xbf16>
    %18 = vector.extract_strided_slice %11 {offsets = [0, 64], sizes = [16, 16], strides = [1, 1]} : vector<16x96xf32> to vector<16x16xf32>
    %19 = arith.truncf %18 : vector<16x16xf32> to vector<16x16xbf16>
    "tpu.trace_start"() <{level = 10 : i32, message = "qd,kd->qk"}> : () -> ()
    %cst_11 = arith.constant dense<0.000000e+00> : vector<16x16xf32>
    %20 = tpu.matmul %15, %17, %cst_11 {dimension_numbers = #tpu.dot_dimension_numbers<[1], [1], [0], [0], [0, 0, 1, 0], [], []>} : vector<16x16xbf16>, vector<16x16xbf16>, vector<16x16xf32> -> vector<16x16xf32>
    "tpu.trace_stop"() : () -> ()
    %cst_12 = arith.constant 2.500000e-01 : f32
    %21 = vector.broadcast %cst_12 : f32 to vector<16x16xf32>
    %22 = arith.mulf %20, %21 : vector<16x16xf32>
    %23 = arith.addf %22, %12 : vector<16x16xf32>
    %cst_13 = arith.constant dense<0xFF800000> : vector<16xf32>
    %24 = vector.multi_reduction <maximumf>, %23, %cst_13 [1] : vector<16x16xf32> to vector<16xf32>
    %25 = vector.shape_cast %24 : vector<16xf32> to vector<16x1xf32>
    %26 = vector.broadcast %25 : vector<16x1xf32> to vector<16x16xf32>
    %27 = arith.subf %23, %26 : vector<16x16xf32>
    %28 = math.exp %27 : vector<16x16xf32>
    %cst_14 = arith.constant dense<0.000000e+00> : vector<16xf32>
    %29 = vector.multi_reduction <add>, %28, %cst_14 [1] : vector<16x16xf32> to vector<16xf32>
    %30 = vector.shape_cast %29 : vector<16xf32> to vector<16x1xf32>
    %31 = tpu.reciprocal %30 {approx = true} : vector<16x1xf32> -> vector<16x1xf32>
    %32 = vector.broadcast %31 : vector<16x1xf32> to vector<16x16xf32>
    %33 = arith.mulf %28, %32 : vector<16x16xf32>
    %34 = arith.truncf %33 : vector<16x16xf32> to vector<16x16xbf16>
    %cst_15 = arith.constant dense<0.000000e+00> : vector<16x16xf32>
    %35 = tpu.matmul %34, %19, %cst_15 {dimension_numbers = #tpu.dot_dimension_numbers<[1], [0], [0], [1], [0, 0, 1, 1], [], []>} : vector<16x16xbf16>, vector<16x16xbf16>, vector<16x16xf32> -> vector<16x16xf32>
    %36 = arith.truncf %35 : vector<16x16xf32> to vector<16x16xbf16>
    %c0_16 = arith.constant 0 : index
    %c0_17 = arith.constant 0 : index
    %c0_18 = arith.constant 0 : index
    %37 = vector.load %arg6[%c0_16, %c0_17, %c0_18] : memref<1x32x32xbf16, #tpu.memory_space<vmem>>, vector<1x16x32xbf16>
    %38 = vector.shape_cast %37 : vector<1x16x32xbf16> to vector<16x32xbf16>
    %cst_19 = arith.constant dense<0.000000e+00> : vector<16x32xf32>
    %39 = tpu.matmul %36, %38, %cst_19 {dimension_numbers = #tpu.dot_dimension_numbers<[1], [0], [0], [1], [0, 0, 1, 1], [], []>} : vector<16x16xbf16>, vector<16x32xbf16>, vector<16x32xf32> -> vector<16x32xf32>
    %40 = arith.addf %13, %39 : vector<16x32xf32>
    %41 = vector.extract_strided_slice %11 {offsets = [0, 16], sizes = [16, 16], strides = [1, 1]} : vector<16x96xf32> to vector<16x16xf32>
    %42 = arith.truncf %41 : vector<16x16xf32> to vector<16x16xbf16>
    %43 = vector.extract_strided_slice %11 {offsets = [0, 48], sizes = [16, 16], strides = [1, 1]} : vector<16x96xf32> to vector<16x16xf32>
    %44 = arith.truncf %43 : vector<16x16xf32> to vector<16x16xbf16>
    %45 = vector.extract_strided_slice %11 {offsets = [0, 80], sizes = [16, 16], strides = [1, 1]} : vector<16x96xf32> to vector<16x16xf32>
    %46 = arith.truncf %45 : vector<16x16xf32> to vector<16x16xbf16>
    "tpu.trace_start"() <{level = 10 : i32, message = "qd,kd->qk"}> : () -> ()
    %cst_20 = arith.constant dense<0.000000e+00> : vector<16x16xf32>
    %47 = tpu.matmul %42, %44, %cst_20 {dimension_numbers = #tpu.dot_dimension_numbers<[1], [1], [0], [0], [0, 0, 1, 0], [], []>} : vector<16x16xbf16>, vector<16x16xbf16>, vector<16x16xf32> -> vector<16x16xf32>
    "tpu.trace_stop"() : () -> ()
    %cst_21 = arith.constant 2.500000e-01 : f32
    %48 = vector.broadcast %cst_21 : f32 to vector<16x16xf32>
    %49 = arith.mulf %47, %48 : vector<16x16xf32>
    %50 = arith.addf %49, %12 : vector<16x16xf32>
    %cst_22 = arith.constant dense<0xFF800000> : vector<16xf32>
    %51 = vector.multi_reduction <maximumf>, %50, %cst_22 [1] : vector<16x16xf32> to vector<16xf32>
    %52 = vector.shape_cast %51 : vector<16xf32> to vector<16x1xf32>
    %53 = vector.broadcast %52 : vector<16x1xf32> to vector<16x16xf32>
    %54 = arith.subf %50, %53 : vector<16x16xf32>
    %55 = math.exp %54 : vector<16x16xf32>
    %cst_23 = arith.constant dense<0.000000e+00> : vector<16xf32>
    %56 = vector.multi_reduction <add>, %55, %cst_23 [1] : vector<16x16xf32> to vector<16xf32>
    %57 = vector.shape_cast %56 : vector<16xf32> to vector<16x1xf32>
    %58 = tpu.reciprocal %57 {approx = true} : vector<16x1xf32> -> vector<16x1xf32>
    %59 = vector.broadcast %58 : vector<16x1xf32> to vector<16x16xf32>
    %60 = arith.mulf %55, %59 : vector<16x16xf32>
    %61 = arith.truncf %60 : vector<16x16xf32> to vector<16x16xbf16>
    %cst_24 = arith.constant dense<0.000000e+00> : vector<16x16xf32>
    %62 = tpu.matmul %61, %46, %cst_24 {dimension_numbers = #tpu.dot_dimension_numbers<[1], [0], [0], [1], [0, 0, 1, 1], [], []>} : vector<16x16xbf16>, vector<16x16xbf16>, vector<16x16xf32> -> vector<16x16xf32>
    %63 = arith.truncf %62 : vector<16x16xf32> to vector<16x16xbf16>
    %c0_25 = arith.constant 0 : index
    %c16 = arith.constant 16 : index
    %c0_26 = arith.constant 0 : index
    %64 = vector.load %arg6[%c0_25, %c16, %c0_26] : memref<1x32x32xbf16, #tpu.memory_space<vmem>>, vector<1x16x32xbf16>
    %65 = vector.shape_cast %64 : vector<1x16x32xbf16> to vector<16x32xbf16>
    %cst_27 = arith.constant dense<0.000000e+00> : vector<16x32xf32>
    %66 = tpu.matmul %63, %65, %cst_27 {dimension_numbers = #tpu.dot_dimension_numbers<[1], [0], [0], [1], [0, 0, 1, 1], [], []>} : vector<16x16xbf16>, vector<16x32xbf16>, vector<16x32xf32> -> vector<16x32xf32>
    %67 = arith.addf %40, %66 : vector<16x32xf32>
    %c0_28 = arith.constant 0 : index
    %c0_29 = arith.constant 0 : index
    %c0_30 = arith.constant 0 : index
    %68 = vector.load %arg7[%c0_28, %c0_29, %c0_30] : memref<1x1x32xf32, #tpu.memory_space<vmem>>, vector<1x1x32xf32>
    %69 = vector.shape_cast %68 : vector<1x1x32xf32> to vector<1x32xf32>
    %70 = vector.broadcast %69 : vector<1x32xf32> to vector<16x32xf32>
    %71 = arith.addf %67, %70 : vector<16x32xf32>
    %72 = arith.addf %3, %71 : vector<16x32xf32>
    %c0_31 = arith.constant 0 : index
    %c0_32 = arith.constant 0 : index
    %c0_33 = arith.constant 0 : index
    %73 = vector.load %arg8[%c0_31, %c0_32, %c0_33] : memref<1x2x32xf32, #tpu.memory_space<vmem>>, vector<1x1x32xf32>
    %74 = vector.shape_cast %73 : vector<1x1x32xf32> to vector<1x32xf32>
    %c0_34 = arith.constant 0 : index
    %c1 = arith.constant 1 : index
    %c0_35 = arith.constant 0 : index
    %75 = vector.load %arg8[%c0_34, %c1, %c0_35] : memref<1x2x32xf32, #tpu.memory_space<vmem>>, vector<1x1x32xf32>
    %76 = vector.shape_cast %75 : vector<1x1x32xf32> to vector<1x32xf32>
    %cst_36 = arith.constant dense<0.000000e+00> : vector<16xf32>
    %77 = vector.multi_reduction <add>, %72, %cst_36 [1] : vector<16x32xf32> to vector<16xf32>
    %78 = vector.shape_cast %77 : vector<16xf32> to vector<16x1xf32>
    %cst_37 = arith.constant 3.200000e+01 : f32
    %79 = vector.broadcast %cst_37 : f32 to vector<16x1xf32>
    %80 = arith.divf %78, %79 : vector<16x1xf32>
    %81 = vector.broadcast %80 : vector<16x1xf32> to vector<16x32xf32>
    %82 = arith.subf %72, %81 : vector<16x32xf32>
    %83 = arith.mulf %82, %82 : vector<16x32xf32>
    %cst_38 = arith.constant dense<0.000000e+00> : vector<16xf32>
    %84 = vector.multi_reduction <add>, %83, %cst_38 [1] : vector<16x32xf32> to vector<16xf32>
    %85 = vector.shape_cast %84 : vector<16xf32> to vector<16x1xf32>
    %cst_39 = arith.constant 3.200000e+01 : f32
    %86 = vector.broadcast %cst_39 : f32 to vector<16x1xf32>
    %87 = arith.divf %85, %86 : vector<16x1xf32>
    %88 = vector.broadcast %80 : vector<16x1xf32> to vector<16x32xf32>
    %89 = arith.subf %72, %88 : vector<16x32xf32>
    %cst_40 = arith.constant 9.99999996E-13 : f32
    %90 = vector.broadcast %cst_40 : f32 to vector<16x1xf32>
    %91 = arith.addf %87, %90 : vector<16x1xf32>
    %92 = math.rsqrt %91 : vector<16x1xf32>
    %93 = vector.broadcast %92 : vector<16x1xf32> to vector<16x32xf32>
    %94 = arith.mulf %89, %93 : vector<16x32xf32>
    %95 = vector.broadcast %74 : vector<1x32xf32> to vector<16x32xf32>
    %96 = arith.mulf %94, %95 : vector<16x32xf32>
    %97 = vector.broadcast %76 : vector<1x32xf32> to vector<16x32xf32>
    %98 = arith.addf %96, %97 : vector<16x32xf32>
    %99 = arith.truncf %98 : vector<16x32xf32> to vector<16x32xbf16>
    %c0_41 = arith.constant 0 : index
    %c0_42 = arith.constant 0 : index
    %c0_43 = arith.constant 0 : index
    %100 = vector.load %arg9[%c0_41, %c0_42, %c0_43] : memref<1x32x64xbf16, #tpu.memory_space<vmem>>, vector<1x32x64xbf16>
    %101 = vector.shape_cast %100 : vector<1x32x64xbf16> to vector<32x64xbf16>
    %cst_44 = arith.constant dense<0.000000e+00> : vector<16x64xf32>
    %102 = tpu.matmul %99, %101, %cst_44 {dimension_numbers = #tpu.dot_dimension_numbers<[1], [0], [0], [1], [0, 0, 1, 1], [], []>} : vector<16x32xbf16>, vector<32x64xbf16>, vector<16x64xf32> -> vector<16x64xf32>
    %c0_45 = arith.constant 0 : index
    %c0_46 = arith.constant 0 : index
    %c0_47 = arith.constant 0 : index
    %103 = vector.load %arg10[%c0_45, %c0_46, %c0_47] : memref<1x1x64xf32, #tpu.memory_space<vmem>>, vector<1x1x64xf32>
    %104 = vector.shape_cast %103 : vector<1x1x64xf32> to vector<1x64xf32>
    %105 = vector.broadcast %104 : vector<1x64xf32> to vector<16x64xf32>
    %106 = arith.addf %102, %105 : vector<16x64xf32>
    %107 = arith.mulf %106, %106 : vector<16x64xf32>
    %108 = arith.mulf %106, %107 : vector<16x64xf32>
    %cst_48 = arith.constant 4.471500e-02 : f32
    %109 = vector.broadcast %cst_48 : f32 to vector<16x64xf32>
    %110 = arith.mulf %109, %108 : vector<16x64xf32>
    %111 = arith.addf %106, %110 : vector<16x64xf32>
    %cst_49 = arith.constant 0.797884583 : f32
    %112 = vector.broadcast %cst_49 : f32 to vector<16x64xf32>
    %113 = arith.mulf %112, %111 : vector<16x64xf32>
    %114 = math.tanh %113 : vector<16x64xf32>
    %cst_50 = arith.constant 1.000000e+00 : f32
    %115 = vector.broadcast %cst_50 : f32 to vector<16x64xf32>
    %116 = arith.addf %115, %114 : vector<16x64xf32>
    %cst_51 = arith.constant 5.000000e-01 : f32
    %117 = vector.broadcast %cst_51 : f32 to vector<16x64xf32>
    %118 = arith.mulf %117, %116 : vector<16x64xf32>
    %119 = arith.mulf %106, %118 : vector<16x64xf32>
    %120 = arith.truncf %119 : vector<16x64xf32> to vector<16x64xbf16>
    %c0_52 = arith.constant 0 : index
    %c0_53 = arith.constant 0 : index
    %c0_54 = arith.constant 0 : index
    %121 = vector.load %arg11[%c0_52, %c0_53, %c0_54] : memref<1x64x32xbf16, #tpu.memory_space<vmem>>, vector<1x64x32xbf16>
    %122 = vector.shape_cast %121 : vector<1x64x32xbf16> to vector<64x32xbf16>
    %cst_55 = arith.constant dense<0.000000e+00> : vector<16x32xf32>
    %123 = tpu.matmul %120, %122, %cst_55 {dimension_numbers = #tpu.dot_dimension_numbers<[1], [0], [0], [1], [0, 0, 1, 1], [], []>} : vector<16x64xbf16>, vector<64x32xbf16>, vector<16x32xf32> -> vector<16x32xf32>
    %c0_56 = arith.constant 0 : index
    %c0_57 = arith.constant 0 : index
    %c0_58 = arith.constant 0 : index
    %124 = vector.load %arg12[%c0_56, %c0_57, %c0_58] : memref<1x1x32xf32, #tpu.memory_space<vmem>>, vector<1x1x32xf32>
    %125 = vector.shape_cast %124 : vector<1x1x32xf32> to vector<1x32xf32>
    %126 = vector.broadcast %125 : vector<1x32xf32> to vector<16x32xf32>
    %127 = arith.addf %123, %126 : vector<16x32xf32>
    %128 = arith.addf %98, %127 : vector<16x32xf32>
    %c0_59 = arith.constant 0 : index
    %c0_60 = arith.constant 0 : index
    %c0_61 = arith.constant 0 : index
    %129 = vector.load %arg13[%c0_59, %c0_60, %c0_61] : memref<1x2x32xf32, #tpu.memory_space<vmem>>, vector<1x1x32xf32>
    %130 = vector.shape_cast %129 : vector<1x1x32xf32> to vector<1x32xf32>
    %c0_62 = arith.constant 0 : index
    %c1_63 = arith.constant 1 : index
    %c0_64 = arith.constant 0 : index
    %131 = vector.load %arg13[%c0_62, %c1_63, %c0_64] : memref<1x2x32xf32, #tpu.memory_space<vmem>>, vector<1x1x32xf32>
    %132 = vector.shape_cast %131 : vector<1x1x32xf32> to vector<1x32xf32>
    %cst_65 = arith.constant dense<0.000000e+00> : vector<16xf32>
    %133 = vector.multi_reduction <add>, %128, %cst_65 [1] : vector<16x32xf32> to vector<16xf32>
    %134 = vector.shape_cast %133 : vector<16xf32> to vector<16x1xf32>
    %cst_66 = arith.constant 3.200000e+01 : f32
    %135 = vector.broadcast %cst_66 : f32 to vector<16x1xf32>
    %136 = arith.divf %134, %135 : vector<16x1xf32>
    %137 = vector.broadcast %136 : vector<16x1xf32> to vector<16x32xf32>
    %138 = arith.subf %128, %137 : vector<16x32xf32>
    %139 = arith.mulf %138, %138 : vector<16x32xf32>
    %cst_67 = arith.constant dense<0.000000e+00> : vector<16xf32>
    %140 = vector.multi_reduction <add>, %139, %cst_67 [1] : vector<16x32xf32> to vector<16xf32>
    %141 = vector.shape_cast %140 : vector<16xf32> to vector<16x1xf32>
    %cst_68 = arith.constant 3.200000e+01 : f32
    %142 = vector.broadcast %cst_68 : f32 to vector<16x1xf32>
    %143 = arith.divf %141, %142 : vector<16x1xf32>
    %144 = vector.broadcast %136 : vector<16x1xf32> to vector<16x32xf32>
    %145 = arith.subf %128, %144 : vector<16x32xf32>
    %cst_69 = arith.constant 9.99999996E-13 : f32
    %146 = vector.broadcast %cst_69 : f32 to vector<16x1xf32>
    %147 = arith.addf %143, %146 : vector<16x1xf32>
    %148 = math.rsqrt %147 : vector<16x1xf32>
    %149 = vector.broadcast %148 : vector<16x1xf32> to vector<16x32xf32>
    %150 = arith.mulf %145, %149 : vector<16x32xf32>
    %151 = vector.broadcast %130 : vector<1x32xf32> to vector<16x32xf32>
    %152 = arith.mulf %150, %151 : vector<16x32xf32>
    %153 = vector.broadcast %132 : vector<1x32xf32> to vector<16x32xf32>
    %154 = arith.addf %152, %153 : vector<16x32xf32>
    %c0_70 = arith.constant 0 : index
    %c0_71 = arith.constant 0 : index
    %155 = vector.load %arg18[%c0_70, %c0_71] : memref<16x32xf32, #tpu.memory_space<vmem>>, vector<16x32xf32>
    tpu.vector_store %arg18[%c0_70, %c0_71], %154 {strides = array<i32>} : memref<16x32xf32, #tpu.memory_space<vmem>>, vector<16x32xf32>,
    %c1_i32 = arith.constant 1 : i32
    %156 = arith.cmpi eq, %arg0, %c1_i32 : i32
    %157 = arith.extui %156 : i1 to i32
    %c0_i32_72 = arith.constant 0 : i32
    %158 = arith.cmpi ne, %157, %c0_i32_72 : i32
    scf.if %158 {
      %c0_73 = arith.constant 0 : index
      %c0_74 = arith.constant 0 : index
      %159 = vector.load %arg14[%c0_73, %c0_74] : memref<8x16xf32, #tpu.memory_space<vmem>>, vector<8x16xf32>
      %cst_75 = arith.constant dense<0.000000e+00> : vector<8x32xf32>
      %160 = tpu.matmul %159, %154, %cst_75 {dimension_numbers = #tpu.dot_dimension_numbers<[1], [0], [0], [1], [0, 0, 1, 1], [], []>} : vector<8x16xf32>, vector<16x32xf32>, vector<8x32xf32> -> vector<8x32xf32>
      %161 = arith.truncf %160 : vector<8x32xf32> to vector<8x32xbf16>
      %c0_76 = arith.constant 0 : index
      %c0_77 = arith.constant 0 : index
      %162 = vector.load %arg15[%c0_76, %c0_77] : memref<32x32xbf16, #tpu.memory_space<vmem>>, vector<32x32xbf16>
      %cst_78 = arith.constant dense<0.000000e+00> : vector<8x32xf32>
      %163 = tpu.matmul %161, %162, %cst_78 {dimension_numbers = #tpu.dot_dimension_numbers<[1], [0], [0], [1], [0, 0, 1, 1], [], []>} : vector<8x32xbf16>, vector<32x32xbf16>, vector<8x32xf32> -> vector<8x32xf32>
      %c0_79 = arith.constant 0 : index
      %c0_80 = arith.constant 0 : index
      %164 = vector.load %arg16[%c0_79, %c0_80] : memref<1x32xf32, #tpu.memory_space<vmem>>, vector<1x32xf32>
      %165 = vector.broadcast %164 : vector<1x32xf32> to vector<8x32xf32>
      %166 = arith.addf %163, %165 : vector<8x32xf32>
      %c0_81 = arith.constant 0 : index
      %c0_82 = arith.constant 0 : index
      %167 = vector.load %arg17[%c0_81, %c0_82] : memref<8x32xf32, #tpu.memory_space<vmem>>, vector<8x32xf32>
      tpu.vector_store %arg17[%c0_81, %c0_82], %166 {strides = array<i32>} : memref<8x32xf32, #tpu.memory_space<vmem>>, vector<8x32xf32>,
    } else {
    }
    return
  }
  func.func @transform_0(%arg0: i32) -> (i32, i32) {
    %c0_i32 = arith.constant 0 : i32
    %c0_i32_0 = arith.constant 0 : i32
    %c0_i32_1 = arith.constant 0 : i32
    return %c0_i32, %c0_i32_0 : i32, i32
  }
  func.func @transform_1(%arg0: i32) -> (i32, i32) {
    %c0_i32 = arith.constant 0 : i32
    %c0_i32_0 = arith.constant 0 : i32
    %c0_i32_1 = arith.constant 0 : i32
    return %c0_i32, %c0_i32_0 : i32, i32
  }
  func.func @transform_2(%arg0: i32) -> (i32, i32) {
    %c0_i32 = arith.constant 0 : i32
    %c0_i32_0 = arith.constant 0 : i32
    %c0_i32_1 = arith.constant 0 : i32
    return %c0_i32, %c0_i32_0 : i32, i32
  }
  func.func @transform_3(%arg0: i32) -> (i32, i32, i32) {
    %c0_i32 = arith.constant 0 : i32
    %c0_i32_0 = arith.constant 0 : i32
    %c0_i32_1 = arith.constant 0 : i32
    return %arg0, %c0_i32, %c0_i32_0 : i32, i32, i32
  }
  func.func @transform_4(%arg0: i32) -> (i32, i32, i32) {
    %c0_i32 = arith.constant 0 : i32
    %c0_i32_0 = arith.constant 0 : i32
    %c0_i32_1 = arith.constant 0 : i32
    return %arg0, %c0_i32, %c0_i32_0 : i32, i32, i32
  }
  func.func @transform_5(%arg0: i32) -> (i32, i32, i32) {
    %c0_i32 = arith.constant 0 : i32
    %c0_i32_0 = arith.constant 0 : i32
    %c0_i32_1 = arith.constant 0 : i32
    return %arg0, %c0_i32, %c0_i32_0 : i32, i32, i32
  }
  func.func @transform_6(%arg0: i32) -> (i32, i32, i32) {
    %c0_i32 = arith.constant 0 : i32
    %c0_i32_0 = arith.constant 0 : i32
    %c0_i32_1 = arith.constant 0 : i32
    return %arg0, %c0_i32, %c0_i32_0 : i32, i32, i32
  }
  func.func @transform_7(%arg0: i32) -> (i32, i32, i32) {
    %c0_i32 = arith.constant 0 : i32
    %c0_i32_0 = arith.constant 0 : i32
    %c0_i32_1 = arith.constant 0 : i32
    return %arg0, %c0_i32, %c0_i32_0 : i32, i32, i32
  }
  func.func @transform_8(%arg0: i32) -> (i32, i32, i32) {
    %c0_i32 = arith.constant 0 : i32
    %c0_i32_0 = arith.constant 0 : i32
    %c0_i32_1 = arith.constant 0 : i32
    return %arg0, %c0_i32, %c0_i32_0 : i32, i32, i32
  }
  func.func @transform_9(%arg0: i32) -> (i32, i32, i32) {
    %c0_i32 = arith.constant 0 : i32
    %c0_i32_0 = arith.constant 0 : i32
    %c0_i32_1 = arith.constant 0 : i32
    return %arg0, %c0_i32, %c0_i32_0 : i32, i32, i32
  }
  func.func @transform_10(%arg0: i32) -> (i32, i32, i32) {
    %c0_i32 = arith.constant 0 : i32
    %c0_i32_0 = arith.constant 0 : i32
    %c0_i32_1 = arith.constant 0 : i32
    return %arg0, %c0_i32, %c0_i32_0 : i32, i32, i32
  }
  func.func @transform_11(%arg0: i32) -> (i32, i32, i32) {
    %c0_i32 = arith.constant 0 : i32
    %c0_i32_0 = arith.constant 0 : i32
    %c0_i32_1 = arith.constant 0 : i32
    return %arg0, %c0_i32, %c0_i32_0 : i32, i32, i32
  }
  func.func @transform_12(%arg0: i32) -> (i32, i32, i32) {
    %c0_i32 = arith.constant 0 : i32
    %c0_i32_0 = arith.constant 0 : i32
    %c0_i32_1 = arith.constant 0 : i32
    return %arg0, %c0_i32, %c0_i32_0 : i32, i32, i32
  }
  func.func @transform_13(%arg0: i32) -> (i32, i32) {
    %c0_i32 = arith.constant 0 : i32
    %c0_i32_0 = arith.constant 0 : i32
    %c0_i32_1 = arith.constant 0 : i32
    return %c0_i32, %c0_i32_0 : i32, i32
  }
  func.func @transform_14(%arg0: i32) -> (i32, i32) {
    %c0_i32 = arith.constant 0 : i32
    %c0_i32_0 = arith.constant 0 : i32
    %c0_i32_1 = arith.constant 0 : i32
    return %c0_i32, %c0_i32_0 : i32, i32
  }
  func.func @transform_15(%arg0: i32) -> (i32, i32) {
    %c0_i32 = arith.constant 0 : i32
    %c0_i32_0 = arith.constant 0 : i32
    %c0_i32_1 = arith.constant 0 : i32
    return %c0_i32, %c0_i32_0 : i32, i32
  }
  func.func @transform_16(%arg0: i32) -> (i32, i32) {
    %c0_i32 = arith.constant 0 : i32
    %c0_i32_0 = arith.constant 0 : i32
    %c0_i32_1 = arith.constant 0 : i32
    return %c0_i32, %c0_i32_0 : i32, i32
  }
}

</mosaic_0001>

<bundles_post_ra>
// kernel: transformers_encoder_forward.1
= control target key start
LH: loop header
LB: loop body
LE: loop exit
PB: predicated region body
PF: predicated region fallthrough
CT: control target
= control target key end

     0   :  { %s2411_s0 = inlined_call_operand.vmem [shape: f32[16,32], index: 0, kind: input, shape index: {}]   ;;  %s2412_s1 = inlined_call_operand.vmem [shape: f32[16,16], index: 1, kind: input, shape index: {}]   ;;  %s2413_s2 = inlined_call_operand.vmem [shape: f32[2,32], index: 2, kind: input, shape index: {}]   ;;  %s2414_s3 = inlined_call_operand.vmem [shape: bf16[2,32,96], index: 3, kind: input, shape index: {}]   ;;  %s2415_s4 = inlined_call_operand.vmem [shape: f32[2,1,96], index: 4, kind: input, shape index: {}]   ;;  %s2416_s5 = inlined_call_operand.vmem [shape: bf16[2,32,32], index: 5, kind: input, shape index: {}]   ;;  %s2417_s6 = inlined_call_operand.vmem [shape: f32[2,1,32], index: 6, kind: input, shape index: {}]   ;;  %s2418_s7 = inlined_call_operand.vmem [shape: f32[2,2,32], index: 7, kind: input, shape index: {}]   ;;  %s2419_s8 = inlined_call_operand.vmem [shape: bf16[2,32,64], index: 8, kind: input, shape index: {}]   ;;  %s2420_s9 = inlined_call_operand.vmem [shape: f32[2,1,64], index: 9, kind: input, shape index: {}]   ;;  %s2421_s10 = inlined_call_operand.vmem [shape: bf16[2,64,32], index: 10, kind: input, shape index: {}]   ;;  %s2422_s11 = inlined_call_operand.vmem [shape: f32[2,1,32], index: 11, kind: input, shape index: {}]   ;;  %s2423_s12 = inlined_call_operand.vmem [shape: f32[2,2,32], index: 12, kind: input, shape index: {}]   ;;  %s2424_s13 = inlined_call_operand.hbm [shape: f32[8,16], index: 13, kind: input, shape index: {}]   ;;  %s2425_s14 = inlined_call_operand.vmem [shape: bf16[32,32], index: 14, kind: input, shape index: {}]   ;;  %s2426_s15 = inlined_call_operand.vmem [shape: f32[1,32], index: 15, kind: input, shape index: {}]   ;;  %s2427_s16 = inlined_call_operand.hbm [shape: f32[8,32], index: 16, kind: output, shape index: {}]  }
   0x1   :  { %2434 = sst [smem:[#allocation10_spill]] %s2411_s0 }
   0x2   :  { %2435 = sst [smem:[#allocation11_spill]] %s2414_s3 }
   0x3   :  { %2436 = sst [smem:[#allocation12_spill]] %s2416_s5 }
   0x4   :  { %2437 = sst [smem:[#allocation13_spill]] %s2418_s7 }
   0x5   :  { %2438 = sst [smem:[#allocation14_spill]] %s2424_s13 }
   0x6   :  { %2439 = sst [smem:[#allocation15_spill]] %s2425_s14 }
   0x7   :  { %2440 = sst [smem:[#allocation16_spill]] %s2426_s15 }
   0x8   :  { %2441 = sst [smem:[#allocation17_spill]] %s2427_s16 }
   0x9   :  { %21 = vsyncpa [#allocation4], 0 }
   0xa   :  { %22 = vsyncpa [#allocation5], 0  ;;  %s2137_s21 = smov 0  }
   0xb LB: > { %2442 = sst [smem:[#allocation9_spill]] %s2038_s21  ;;  %s2143_s22 = sadd.s32 4294967295, %s2038_s21   ;;  %s2038_s21 = sphi %s2137_s21, %s28_s21  }
   0xc   : > { %p1720_p0 = scmp.ge.s32.totalorder %s2038_s21, 1  ;;  %p440_p1 = scmp.lt.s32.totalorder %s2038_s21, 3 }
   0xd   : > { %p2429_p4 = scmp.eq.s32.totalorder %s2143_s22, 0  ;;  %s2040_s24 = smov [#allocation3]  }
   0xe   : > { %p2148_p3 = pnand %p1720_p0, %p440_p1  ;;  %s462_s25 = sshll.u32 %s2040_s24, 4  ;;  %s463_s25 = int_to_ptr.vmem [resolvable:$true] %s462_s25 }
   0xf   : > { %s2445_s13 = sld [smem:[#allocation14_spill]] }
  0x10   : > { %s2443_s23 = scalar_select %p2148_p3, 1, 0 }
  0x11   : > { %p1898_p5 = pneg %p2148_p3 }
  0x13   : > { %p2157_p6 = pnand %p2429_p4, %p1898_p5 }
  0x15   : > { %s1970_s29 = scalar_lea.hbm %s2445_s13, 128  ;;  %p1972_p8 = pneg %p2157_p6 }
  0x16   : > { %p1971_p7 = scmp.ne.s32.totalorder %s2445_s13, %s1970_s29  ;;  %p1977_p11 = scmp.lt.u32.totalorder %s1970_s29, %s2445_s13 }
  0x18   : > { %p1973_p9 = pnand %p1972_p8, %p1971_p7 }
  0x1a   : > { %p1974_p10 = pneg %p1973_p9 }
  0x1c   : > { %p1979_p12 = pnand %p1977_p11, %p1974_p10 }
  0x1e   : > { %1982 = shalt.err (!%p1979_p12)
}
  0x1f   : > { %s1983_s19 = scalar_lea.vmem %s463_s25, 128  ;;  %p1991_p5 = scmp.lt.s32.totalorder %s463_s25, %s463_s25 }
  0x20   : > { %p1984_p13 = scmp.ne.s32.totalorder %s463_s25, %s1983_s19  ;;  %p1992_p2 = scmp.lt.s32.totalorder %s1983_s19, %s1983_s19 }
  0x22   : > { %p1986_p0 = pnand %p1984_p13, %p1972_p8  ;;  %p1993_p4 = por %p1992_p2, %p1991_p5 }
  0x24   : > { %p1987_p1 = pneg %p1986_p0 }
  0x26   : > { %p1994_p3 = pnand %p1993_p4, %p1987_p1 }
  0x28   : > { %1997 = shalt.err (!%p1994_p3)
}
  0x29   : > { %1901 = dma.hbm_to_vmem [thread:$0]  (!%p2157_p6), %s2445_s13, 128, %s463_s25, [#allocation4]  }
  0x2a   : > { %p2446_p7 = scmp.ne.s32.totalorder %s2443_s23, 0 }
  0x2b   : > { %p2447_p9 = scmp.eq.s32.totalorder (!%p2446_p7), %s2143_s22, 0 }
  0x2c   : > { %551 = sbr.rel (%p2446_p7) target bundleno = 3271 (0xcc7), region = 84 }
  0x33   : > { %2029 = dma.done.wait (%p2447_p9), [#allocation4], 128   ;;  %p2448_p8 = pmov %p2447_p9 }
  0x34   : > { %p631_p2 = scmp.lt.s32.totalorder %s2143_s22, 1  ;;  %s2449_s3 = sld [smem:[#allocation11_spill]] }
  0x35   : > { %2031 = vsyncadd (%p2448_p8), [#allocation4], 4294967168  ;;  %s2450_s5 = sld [smem:[#allocation12_spill]]  ;;  %s2451_s7 = sld [smem:[#allocation13_spill]] }
  0x36   : > { %s2185_s27 = scalar_select %p631_p2, %s2143_s22, 1 }
  0x37   : > { %p2452_p3 = scmp.ne.s32.totalorder %s2143_s22, 0 }
  0x38   : > { %s1775_s23 = sshll.u32 %s2185_s27, 4  ;;  %s1729_s21 = sshll.u32 %s2185_s27, 1  ;;  %vm680_vm0 = vcmask (!%p2452_p3), 261120   ;;  %v1736_v21 = vld [vmem:[%s2413_s2] ss:$0 sm:$0xff] (!%p2452_p3) }
  0x39   : > { %s2215_s29 = scalar_lea.vmem %s2419_s8, %s1775_s23  ;;  %s658_s17 = scalar_lea.vmem %s2420_s9, %s2185_s27  ;;  %v1737_v23 = vld [vmem:[%s2413_s2 + $0x1] ss:$0 sm:$0xff] (!%p2452_p3) }
  0x3a   : > { %s2195_s0 = scalar_lea.vmem %s2449_s3, %s1775_s23  ;;  %s1778_s18 = sshll.u32 %s2185_s27, 5 }
  0x3b   : > { %s2200_s19 = scalar_lea.vmem %s2450_s5, %s1775_s23  ;;  %s2210_s25 = scalar_lea.vmem %s2451_s7, %s1729_s21 }
  0x3c   : > { %s2225_s20 = scalar_lea.vmem %s2421_s10, %s1778_s18  ;;  %s666_s15 = scalar_lea.vmem %s2422_s11, %s2185_s27 }
  0x3d   : > { %s2234_s28 = scalar_lea.vmem %s2423_s12, %s1729_s21  ;;  %675 = sbr.rel (%p2452_p3) target bundleno = 387 (0x183), region = 92 }
  0x3e   : > { %s2453_s26 = sld [smem:[#allocation10_spill]] (!%p2452_p3) }
  0x44   : > { %v676_v0 = vld [vmem:[%s2453_s26] sm:$0xff]  ;;  %v677_v1 = vld [vmem:[%s2453_s26 + $0x8] sm:$0xff] }
  0x45   : > { %v681_v2 = vsel %vm680_vm0, %v676_v0, 0.0  ;;  %v684_v3 = vsel %vm680_vm0, %v677_v1, 0.0 }
  0x46   : > { %682 = vadd.xlane.f32.xlu0 %v681_v2 }
  0x4a   : > { %685 = vadd.xlane.f32.xlu0 %v684_v3 }
  0xd3   : > { %v683_v4 = vpop.xlane.xlu0 %682 }
  0xd4   : > { %v688_v5 = vmul.f32 0.03125, %v683_v4 }
  0xd6   : > { %v690_v6 = vsub.f32 %v676_v0, %v688_v5 }
  0xd7   : > { %v686_v7 = vpop.xlane.xlu0 %685 }
  0xd8   : > { %v689_v8 = vmul.f32 0.03125, %v686_v7  ;;  %v692_v9 = vmul.f32 %v690_v6, %v690_v6 }
  0xda   : > { %v691_v10 = vsub.f32 %v677_v1, %v689_v8  ;;  %v694_v11 = vsel %vm680_vm0, %v692_v9, 0.0 }
  0xdb   : > { %695 = vadd.xlane.f32.xlu1 %v694_v11 }
  0xdc   : > { %v693_v12 = vmul.f32 %v691_v10, %v691_v10 }
  0xde   : > { %v697_v13 = vsel %vm680_vm0, %v693_v12, 0.0 }
  0xdf   : > { %698 = vadd.xlane.f32.xlu1 %v697_v13 }
 0x168   : > { %v696_v14 = vpop.xlane.xlu1 %695 }
 0x169   : > { %v700_v15 = vmul.f32 0.03125, %v696_v14 }
 0x16b   : > { %v702_v16 = vadd.f32 1e-12, %v700_v15 }
 0x16c   : > { %v699_v17 = vpop.xlane.xlu1 %698 }
 0x16d   : > { %1926 = vrsqrt.f32 %v702_v16  ;;  %v701_v18 = vmul.f32 0.03125, %v699_v17 }
 0x16f   : > { %v703_v19 = vadd.f32 1e-12, %v701_v18 }
 0x171   : > { %1928 = vrsqrt.f32 %v703_v19 }
 0x177   : > { %v1927_v20 = vpop.eup %1926 }
 0x178   : > { %v706_v22 = vmul.f32 %v1927_v20, %v690_v6 }
 0x17a   : > { %v712_v24 = vmul.f32 %v1736_v21, %v706_v22 }
 0x17b   : > { %v1929_v25 = vpop.eup %1928 }
 0x17c   : > { %v718_v26 = vadd.f32 %v1737_v23, %v712_v24  ;;  %v707_v27 = vmul.f32 %v1929_v25, %v691_v10 }
 0x17e   : > { %720 = vst.msk [vmem:[#allocation2] sm:$0xff] %vm680_vm0, %v718_v26  ;;  %v713_v28 = vmul.f32 %v1736_v21, %v707_v27 }
 0x180   : > { %v719_v29 = vadd.f32 %v1737_v23, %v713_v28 }
 0x182   : > { %721 = vst.msk [vmem:[#allocation2 + $0x8] sm:$0xff] %vm680_vm0, %v719_v29 }
 0x183 PF: > { %v1930_v30 = vld [vmem:[%s2195_s0] sm:$0xff]   ;;  %v2041_v31 = vmov 0.0   ;;  %v1931_v32 = vld [vmem:[%s2195_s0 + $0x8] sm:$0xff]   ;;  %vm2042_vm1 = vmmov 0   ;;  %vm748_vm2 = vcmask 261120   ;;  %s2454_s24 = scalar_lea.vmem %s2415_s4, %s2185_s27  ;;  %s2043_s16 = smov 112  }
 0x184   : > { %1808 = vmatprep.subr.bf16.mxu1 %v2041_v31  ;;  %1822 = vmatprep.subr.bf16.mxu0 %v2041_v31  ;;  %v1738_v36 = vld [vmem:[%s2454_s24] ss:$0 sm:$0xff]  ;;  %s2044_s3 = smov 96   ;;  %s2045_s23 = smov 80   ;;  %vm799_vm3 = vcmask 130048   ;;  %v794_v54 = vld [vmem:[%s2412_s1 + $0x8] sm:$0xff] }
 0x185   : > { %1809 = vmatpush3.bf16.msra.mxu1 %v1930_v30  ;;  %1812 = vmatprep.mubr.msk.bf16.mxu1 %vm2042_vm1, %v2041_v31  ;;  %v2262_v33 = vld [vmem:[#allocation2] sm:$0xff]  ;;  %v793_v50 = vld [vmem:[%s2412_s1] sm:$0xff]  ;;  %s2046_s21 = smov 48   ;;  %s2047_s30 = smov 64   ;;  %vm1330_vm4 = vcmask 523264  }
 0x186   : > { %1810 = vmatprep.subr.bf16.mxu1 %v2041_v31  ;;  %1824 = vmatprep.mubr.msk.bf16.mxu0 %vm2042_vm1, %v2041_v31  ;;  %s2455_s18 = scalar_lea.vmem %s2417_s6, %s2185_s27  ;;  %p1765_p4 = scmp.ne.s32.totalorder %s2143_s22, 1 }
 0x187   : > { %vm2049_vm5 = vmmov (!%p1765_p4), 0   ;;  %s2457_s5 = sld [smem:[#allocation16_spill]] (!%p1765_p4) }
 0x189   : > { %v2264_v34 = vld [vmem:[#allocation2 + $0x8] sm:$0xff]  ;;  %1811 = vmatpush3.bf16.msra.mxu1 %v1931_v32 }
 0x18a   : > { %v724_v35 = vpack.c.bf16 %v2264_v34, %v2262_v33  ;;  %1816 = vmatprep.subr.bf16.mxu1 %v2041_v31 }
 0x18c   : > { %1813 = vmatmul.mubr.msk.bf16.vlgmr.msra.gmra.mrb[0].mxu1 %vm748_vm2, %v724_v35 }
 0x18d   : > { %1818 = vmatprep.mubr.msk.bf16.mxu1 %vm2042_vm1, %v2041_v31 }
 0x25f   : > { %v786_v37 = vpop.f32.mrb[0].mxu1 }
 0x260   : > { %v1814_v38 = vpop.f32.mrb[1].mxu1  ;;  %v787_v40 = vadd.f32 %v1738_v36, %v786_v37 }
 0x261   : > { %v789_v39 = vpop.f32.mrb[2].mxu1 }
 0x262   : > { %v790_v41 = vadd.f32 %v1738_v36, %v789_v39  ;;  %v1815_v42 = vpop.f32.mrb[3].mxu1 }
 0x264   : > { %v2280_v43 = vpack.c.bf16 %v790_v41, %v787_v40 }
 0x266   : > { %924 = vrot.lane.b32.xlu1 %v2280_v43, %s2043_s16  ;;  %797 = vrot.lane.b32.xlu0 %v2280_v43, %s2044_s3 }
 0x26a   : > { %926 = vrot.lane.b32.xlu0 %v2280_v43, %s2045_s23 }
 0x2d8   : > { %v798_v44 = vpop.permute.xlu0 %797  ;;  %v925_v48 = vpop.permute.xlu1 %924 }
 0x2d9   : > { %v804_v45 = vsel %vm799_vm3, %v798_v44, 0 }
 0x2da   : > { %1817 = vmatpush3.bf16.xpose.msra.mxu1 %v804_v45 }
 0x2db   : > { %1828 = vmatprep.subr.bf16.mxu1 %v2041_v31 }
 0x2dc   : > { %v927_v46 = vpop.permute.xlu0 %926 }
 0x2dd   : > { %v932_v47 = vsel %vm799_vm3, %v927_v46, 0  ;;  %v1932_v46 = vld [vmem:[%s2200_s19] sm:$0xff]  }
 0x2e1   : > { %1819 = vmatmul.mubr.msk.bf16.vlgmr.msra.gmra.mrb[4].mxu1 %vm799_vm3, %v2280_v43 }
 0x2e2   : > { %1829 = vmatpush3.bf16.xpose.msra.mxu1 %v932_v47  ;;  %1830 = vmatprep.mubr.msk.bf16.mxu1 %vm2042_vm1, %v2041_v31  ;;  %v1933_v47 = vld [vmem:[%s2200_s19 + $0x8] sm:$0xff]  }
 0x2e3   : > { %1840 = vmatprep.subr.bf16.mxu1 %v2041_v31 }
 0x2e9   : > { %1831 = vmatmul.mubr.msk.bf16.vlgmr.msra.gmra.mrb[8].mxu1 %vm799_vm3, %v925_v48 }
 0x2ea   : > { %1842 = vmatprep.mubr.msk.bf16.mxu1 %vm2042_vm1, %v2041_v31  ;;  %1841 = vmatpush3.bf16.msra.mxu1 %v1933_v47 }
 0x2eb   : > { %1852 = vmatprep.subr.bf16.mxu1 %v2041_v31 }
 0x3b4   : > { %v840_v49 = vpop.f32.mrb[4].mxu1 }
 0x3b5   : > { %v847_v51 = vmul.f32 0.25, %v840_v49  ;;  %v1820_v52 = vpop.f32.mrb[5].mxu1 }
 0x3b6   : > { %v843_v53 = vpop.f32.mrb[6].mxu1 }
 0x3b7   : > { %v848_v55 = vmul.f32 0.25, %v843_v53  ;;  %v1821_v56 = vpop.f32.mrb[7].mxu1  ;;  %v849_v57 = vadd.f32 %v847_v51, %v793_v50 }
 0x3b9   : > { %v851_v58 = vsel %vm799_vm3, %v849_v57, -inf  ;;  %v850_v59 = vadd.f32 %v848_v55, %v794_v54 }
 0x3ba   : > { %852 = vmax.xlane.f32.xlu1 %v851_v58 }
 0x3bb   : > { %v854_v60 = vsel %vm799_vm3, %v850_v59, -inf }
 0x3bc   : > { %855 = vmax.xlane.f32.xlu0 %v854_v60  ;;  %v968_v61 = vpop.f32.mrb[8].mxu1 }
 0x3bd   : > { %v975_v62 = vmul.f32 0.25, %v968_v61  ;;  %v1832_v63 = vpop.f32.mrb[9].mxu1 }
 0x3be   : > { %v971_v0 = vpop.f32.mrb[10].mxu1  ;;  %v1750_v63 = vld [vmem:[%s2455_s18] ss:$0 sm:$0xff] }
 0x3bf   : > { %v976_v1 = vmul.f32 0.25, %v971_v0  ;;  %v1833_v2 = vpop.f32.mrb[11].mxu1  ;;  %v977_v3 = vadd.f32 %v975_v62, %v793_v50 }
 0x3c1   : > { %v979_v4 = vsel %vm799_vm3, %v977_v3, -inf  ;;  %v978_v5 = vadd.f32 %v976_v1, %v794_v54 }
 0x3c2   : > { %980 = vmax.xlane.f32.xlu0 %v979_v4 }
 0x3c3   : > { %v982_v6 = vsel %vm799_vm3, %v978_v5, -inf }
 0x3c4   : > { %983 = vmax.xlane.f32.xlu1 %v982_v6 }
 0x447   : > { %v853_v7 = vpop.xlane.xlu1 %852 }
 0x448   : > { %v857_v8 = vsub.f32 %v849_v57, %v853_v7 }
 0x449   : > { %v856_v9 = vpop.xlane.xlu0 %855 }
 0x44a   : > { %v859_v10 = vmul.f32 1.442695, %v857_v8  ;;  %v858_v11 = vsub.f32 %v850_v59, %v856_v9 }
 0x44c   : > { %1940 = vpow2.f32 %v859_v10  ;;  %v861_v12 = vmul.f32 1.442695, %v858_v11 }
 0x44e   : > { %1942 = vpow2.f32 %v861_v12 }
 0x44f   : > { %v981_v13 = vpop.xlane.xlu0 %980 }
 0x450   : > { %v985_v14 = vsub.f32 %v977_v3, %v981_v13 }
 0x451   : > { %v984_v15 = vpop.xlane.xlu1 %983 }
 0x452   : > { %v987_v16 = vmul.f32 1.442695, %v985_v14  ;;  %v986_v17 = vsub.f32 %v978_v5, %v984_v15 }
 0x454   : > { %1944 = vpow2.f32 %v987_v16  ;;  %v989_v18 = vmul.f32 1.442695, %v986_v17 }
 0x456   : > { %v1941_v19 = vpop.eup %1940  ;;  %1946 = vpow2.f32 %v989_v18 }
 0x457   : > { %v863_v20 = vsel %vm799_vm3, %v1941_v19, 0.0 }
 0x458   : > { %v1943_v21 = vpop.eup %1942  ;;  %864 = vadd.xlane.f32.xlu0 %v863_v20  ;;  %v1935_v20 = vld [vmem:[%s2215_s29 + $0x8] sm:$0xff]  }
 0x459   : > { %v866_v22 = vsel %vm799_vm3, %v1943_v21, 0.0 }
 0x45a   : > { %867 = vadd.xlane.f32.xlu1 %v866_v22 }
 0x45e   : > { %v1945_v23 = vpop.eup %1944 }
 0x45f   : > { %v991_v24 = vsel %vm799_vm3, %v1945_v23, 0.0 }
 0x460   : > { %v1947_v25 = vpop.eup %1946  ;;  %992 = vadd.xlane.f32.xlu0 %v991_v24 }
 0x461   : > { %v994_v26 = vsel %vm799_vm3, %v1947_v25, 0.0 }
 0x462   : > { %995 = vadd.xlane.f32.xlu1 %v994_v26 }
 0x473   : > { %1002 = vrot.lane.b32.xlu1 %v2280_v43, %s2046_s21 }
 0x476   : > { %874 = vrot.lane.b32.xlu0 %v2280_v43, %s2047_s30 }
 0x4e5   : > { %v865_v27 = vpop.xlane.xlu0 %864 }
 0x4e6   : > { %1948 = vrcp.f32 %v865_v27 }
 0x4e7   : > { %v868_v28 = vpop.xlane.xlu1 %867 }
 0x4e8   : > { %1950 = vrcp.f32 %v868_v28  ;;  %v1751_v28 = vld [vmem:[%s2210_s25] ss:$0 sm:$0xff] }
 0x4ed   : > { %v993_v29 = vpop.xlane.xlu0 %992 }
 0x4ee   : > { %1952 = vrcp.f32 %v993_v29 }
 0x4ef   : > { %v996_v30 = vpop.xlane.xlu1 %995 }
 0x4f0   : > { %v1949_v32 = vpop.eup %1948  ;;  %1954 = vrcp.f32 %v996_v30 }
 0x4f1   : > { %v875_v35 = vpop.permute.xlu0 %874  ;;  %v871_v37 = vmul.f32 %v1949_v32, %v1941_v19 }
 0x4f2   : > { %v1951_v36 = vpop.eup %1950  ;;  %1823 = vmatpush3.bf16.msra.mxu0 %v875_v35 }
 0x4f3   : > { %1834 = vmatprep.subr.bf16.mxu0 %v2041_v31  ;;  %v872_v38 = vmul.f32 %v1951_v36, %v1943_v21  ;;  %v1003_v40 = vpop.permute.xlu1 %1002  ;;  %v1752_v36 = vld [vmem:[%s2210_s25 + $0x1] ss:$0 sm:$0xff] }
 0x4f5   : > { %v873_v39 = vpack.c.bf16 %v872_v38, %v871_v37 }
 0x4f7   : > { %1825 = vmatmul.mubr.msk.bf16.vlgmr.msra.gmra.mrb[0].mxu0 %vm799_vm3, %v873_v39 }
 0x4f8   : > { %v1953_v41 = vpop.eup %1952  ;;  %1835 = vmatpush3.bf16.msra.mxu0 %v1003_v40  ;;  %1836 = vmatprep.mubr.msk.bf16.mxu0 %vm2042_vm1, %v2041_v31 }
 0x4f9   : > { %1846 = vmatprep.subr.bf16.mxu0 %v2041_v31  ;;  %v999_v43 = vmul.f32 %v1953_v41, %v1945_v23  ;;  %v1936_v41 = vld [vmem:[%s2225_s20] sm:$0xff]  }
 0x4fa   : > { %v1955_v42 = vpop.eup %1954 }
 0x4fb   : > { %v1000_v44 = vmul.f32 %v1955_v42, %v1947_v25  ;;  %v1937_v42 = vld [vmem:[%s2225_s20 + $0x8] sm:$0xff]  }
 0x4fd   : > { %v1001_v45 = vpack.c.bf16 %v1000_v44, %v999_v43  ;;  %v1938_v43 = vld [vmem:[%s2225_s20 + $0x10] sm:$0xff]   ;;  %v1939_v44 = vld [vmem:[%s2225_s20 + $0x18] sm:$0xff]  }
 0x4ff   : > { %1837 = vmatmul.mubr.msk.bf16.vlgmr.msra.gmra.mrb[4].mxu0 %vm799_vm3, %v1001_v45  ;;  %v1753_v45 = vld [vmem:[%s658_s17] ss:$0 sm:$0xff] }
 0x500   : > { %1848 = vmatprep.mubr.msk.bf16.mxu0 %vm2042_vm1, %v2041_v31  ;;  %1847 = vmatpush3.bf16.msra.mxu0 %v1932_v46 }
 0x501   : > { %1860 = vmatprep.subr.bf16.mxu0 %v2041_v31 }
 0x5ca   : > { %v914_v48 = vpop.f32.mrb[0].mxu0 }
 0x5cb   : > { %v1826_v49 = vpop.f32.mrb[1].mxu0 }
 0x5cc   : > { %v917_v50 = vpop.f32.mrb[2].mxu0 }
 0x5cd   : > { %v921_v51 = vpack.c.bf16 %v917_v50, %v914_v48  ;;  %v1827_v52 = vpop.f32.mrb[3].mxu0 }
 0x5cf   : > { %1849 = vmatmul.mubr.msk.bf16.vlgmr.msra.gmra.mrb[8].mxu0 %vm799_vm3, %v921_v51 }
 0x5d0   : > { %1868 = vmatprep.mubr.msk.bf16.mxu0 %vm2042_vm1, %v2041_v31  ;;  %1861 = vmatpush3.bf16.msra.mxu0 %v1936_v41 }
 0x5d1   : > { %1862 = vmatprep.subr.bf16.mxu0 %v2041_v31 }
 0x5d2   : > { %v1042_v53 = vpop.f32.mrb[4].mxu0 }
 0x5d3   : > { %v1838_v54 = vpop.f32.mrb[5].mxu0 }
 0x5d4   : > { %v1045_v55 = vpop.f32.mrb[6].mxu0  ;;  %1863 = vmatpush3.bf16.msra.mxu0 %v1937_v42 }
 0x5d5   : > { %v1049_v56 = vpack.c.bf16 %v1045_v55, %v1042_v53  ;;  %v1839_v57 = vpop.f32.mrb[7].mxu0  ;;  %1864 = vmatprep.subr.bf16.mxu0 %v2041_v31 }
 0x5d7   : > { %1843 = vmatmul.mubr.msk.bf16.vlgmr.msra.gmra.mrb[12].mxu1 %vm799_vm3, %v1049_v56 }
 0x5d8   : > { %1856 = vmatprep.mubr.msk.bf16.mxu1 %vm2042_vm1, %v2041_v31  ;;  %1865 = vmatpush3.bf16.msra.mxu0 %v1938_v43 }
 0x5d9   : > { %1866 = vmatprep.subr.bf16.mxu0 %v2041_v31 }
 0x5dc   : > { %1867 = vmatpush3.bf16.msra.mxu0 %v1939_v44 }
 0x6a2   : > { %v1145_v58 = vpop.f32.mrb[8].mxu0 }
 0x6a3   : > { %v1850_v59 = vpop.f32.mrb[9].mxu0 }
 0x6a4   : > { %v1148_v60 = vpop.f32.mrb[10].mxu0 }
 0x6a5   : > { %v1851_v61 = vpop.f32.mrb[11].mxu0 }
 0x6aa   : > { %v1095_v62 = vpop.f32.mrb[12].mxu1 }
 0x6ab   : > { %v1146_v0 = vadd.f32 %v1145_v58, %v1095_v62  ;;  %v1844_v1 = vpop.f32.mrb[13].mxu1 }
 0x6ac   : > { %v1098_v2 = vpop.f32.mrb[14].mxu1 }
 0x6ad   : > { %v1159_v3 = vadd.f32 %v1750_v63, %v1146_v0  ;;  %v1149_v4 = vadd.f32 %v1148_v60, %v1098_v2  ;;  %v1845_v5 = vpop.f32.mrb[15].mxu1 }
 0x6af   : > { %v1160_v6 = vadd.f32 %v1750_v63, %v1149_v4  ;;  %v1161_v7 = vadd.f32 %v1159_v3, %v2262_v33 }
 0x6b1   : > { %v1165_v8 = vsel %vm748_vm2, %v1161_v7, 0.0  ;;  %v1162_v9 = vadd.f32 %v1160_v6, %v2264_v34  ;;  %v1934_v34 = vld [vmem:[%s2215_s29] sm:$0xff]  }
 0x6b2   : > { %1166 = vadd.xlane.f32.xlu1 %v1165_v8  ;;  %1853 = vmatpush3.bf16.msra.mxu1 %v1934_v34  ;;  %v1757_v6 = vld [vmem:[%s666_s15] ss:$0 sm:$0xff] }
 0x6b3   : > { %v1168_v10 = vsel %vm748_vm2, %v1162_v9, 0.0  ;;  %1854 = vmatprep.subr.bf16.mxu1 %v2041_v31 }
 0x6b4   : > { %1169 = vadd.xlane.f32.xlu0 %v1168_v10 }
 0x6b6   : > { %1855 = vmatpush3.bf16.msra.mxu1 %v1935_v20 }
 0x73f   : > { %v1167_v11 = vpop.xlane.xlu1 %1166 }
 0x740   : > { %v1172_v12 = vmul.f32 0.03125, %v1167_v11 }
 0x741   : > { %v1170_v13 = vpop.xlane.xlu0 %1169 }
 0x742   : > { %v1174_v14 = vsub.f32 %v1161_v7, %v1172_v12  ;;  %v1173_v15 = vmul.f32 0.03125, %v1170_v13 }
 0x744   : > { %v1175_v16 = vsub.f32 %v1162_v9, %v1173_v15  ;;  %v1176_v17 = vmul.f32 %v1174_v14, %v1174_v14 }
 0x746   : > { %v1178_v18 = vsel %vm748_vm2, %v1176_v17, 0.0  ;;  %v1177_v33 = vmul.f32 %v1175_v16, %v1175_v16 }
 0x747   : > { %1179 = vadd.xlane.f32.xlu0 %v1178_v18 }
 0x748   : > { %v1181_v19 = vsel %vm748_vm2, %v1177_v33, 0.0 }
 0x749   : > { %1182 = vadd.xlane.f32.xlu1 %v1181_v19 }
 0x7d4   : > { %v1180_v21 = vpop.xlane.xlu0 %1179 }
 0x7d5   : > { %v1184_v22 = vmul.f32 0.03125, %v1180_v21 }
 0x7d6   : > { %v1183_v23 = vpop.xlane.xlu1 %1182 }
 0x7d7   : > { %v1186_v24 = vadd.f32 1e-12, %v1184_v22  ;;  %v1185_v25 = vmul.f32 0.03125, %v1183_v23 }
 0x7d9   : > { %1956 = vrsqrt.f32 %v1186_v24  ;;  %v1187_v26 = vadd.f32 1e-12, %v1185_v25 }
 0x7db   : > { %1958 = vrsqrt.f32 %v1187_v26 }
 0x7e3   : > { %v1957_v27 = vpop.eup %1956 }
 0x7e4   : > { %v1190_v29 = vmul.f32 %v1957_v27, %v1174_v14 }
 0x7e5   : > { %v1959_v30 = vpop.eup %1958 }
 0x7e6   : > { %v1196_v32 = vmul.f32 %v1751_v28, %v1190_v29  ;;  %v1191_v35 = vmul.f32 %v1959_v30, %v1175_v16 }
 0x7e8   : > { %v1197_v37 = vmul.f32 %v1751_v28, %v1191_v35  ;;  %v1202_v38 = vadd.f32 %v1752_v36, %v1196_v32  ;;  %v1763_v35 = vld [vmem:[%s2234_s28] ss:$0 sm:$0xff] }
 0x7ea   : > { %v1203_v39 = vadd.f32 %v1752_v36, %v1197_v37 }
 0x7ec   : > { %v1204_v40 = vpack.c.bf16 %v1203_v39, %v1202_v38 }
 0x7ee   : > { %1857 = vmatmul.mubr.msk.bf16.vlgmr.msra.gmra.mrb[16].mxu1 %vm748_vm2, %v1204_v40 }
 0x8c1   : > { %v1265_v46 = vpop.f32.mrb[16].mxu1 }
 0x8c2   : > { %v1266_v47 = vadd.f32 %v1753_v45, %v1265_v46  ;;  %v1858_v48 = vpop.f32.mrb[17].mxu1  ;;  %v2050_v46 = vmov (!%p1765_p4), 0.0  }
 0x8c3   : > { %v1268_v49 = vpop.f32.mrb[18].mxu1  ;;  %v1423_v48 = vld [vmem:[#allocation3] sm:$0xff] (!%p1765_p4)  ;;  %1879 = vmatprep.subr.bf16.mxu1 (!%p1765_p4), %v2050_v46  ;;  %1883 = vmatprep.mubr.msk.bf16.mxu1 (!%p1765_p4), %vm2049_vm5, %v2050_v46 }
 0x8c4   : > { %v1272_v50 = vmul.f32 %v1266_v47, %v1266_v47  ;;  %v1269_v51 = vadd.f32 %v1753_v45, %v1268_v49  ;;  %v1859_v52 = vpop.f32.mrb[19].mxu1  ;;  %v2048_v45 = vmov (!%p1765_p4), 0.0|0.0  }
 0x8c5   : > { %1887 = vmatprep.subr.bf16.mxu0 (!%p1765_p4), %v2048_v45 }
 0x8c6   : > { %v1274_v53 = vmul.f32 %v1272_v50, %v1266_v47  ;;  %v1273_v54 = vmul.f32 %v1269_v51, %v1269_v51 }
 0x8c8   : > { %v1276_v55 = vmul.f32 0.044715, %v1274_v53  ;;  %v1275_v56 = vmul.f32 %v1273_v54, %v1269_v51  ;;  %v1767_v53 = vld [vmem:[%s2457_s5] ss:$0 sm:$0xff] (!%p1765_p4) }
 0x8ca   : > { %v1278_v57 = vadd.f32 %v1276_v55, %v1266_v47  ;;  %v1277_v31 = vmul.f32 0.044715, %v1275_v56 }
 0x8cc   : > { %v1280_v58 = vmul.f32 0.7978846, %v1278_v57  ;;  %v1279_v59 = vadd.f32 %v1277_v31, %v1269_v51 }
 0x8ce   : > { %1960 = vtanh.f32 %v1280_v58  ;;  %v1281_v60 = vmul.f32 0.7978846, %v1279_v59 }
 0x8d0   : > { %1962 = vtanh.f32 %v1281_v60 }
 0x8d8   : > { %v1961_v61 = vpop.eup %1960 }
 0x8d9   : > { %v1284_v62 = vadd.f32 1.0, %v1961_v61 }
 0x8da   : > { %v1963_v63 = vpop.eup %1962 }
 0x8db   : > { %v1286_v0 = vmul.f32 0.5, %v1284_v62  ;;  %v1285_v1 = vadd.f32 1.0, %v1963_v63 }
 0x8dd   : > { %v1287_v2 = vmul.f32 0.5, %v1285_v1  ;;  %v1288_v3 = vmul.f32 %v1286_v0, %v1266_v47 }
 0x8df   : > { %v1289_v4 = vmul.f32 %v1287_v2, %v1269_v51 }
 0x8e1   : > { %v1290_v5 = vpack.c.bf16 %v1289_v4, %v1288_v3 }
 0x8e3   : > { %1869 = vmatmul.mubr.msk.bf16.vlgmr.msra.gmra.mrb[12].mxu0 %vm1330_vm4, %v1290_v5 }
 0x8e4   : > { %1876 = vmatprep.mubr.msk.f32.mxu0 (!%p1765_p4), %vm2049_vm5, %v2050_v46 }
 0x9b6   : > { %v1368_v7 = vpop.f32.mrb[12].mxu0 }
 0x9b7   : > { %v1369_v8 = vadd.f32 %v1757_v6, %v1368_v7  ;;  %v1870_v9 = vpop.f32.mrb[13].mxu0 }
 0x9b8   : > { %v1371_v10 = vpop.f32.mrb[14].mxu0 }
 0x9b9   : > { %v1372_v11 = vadd.f32 %v1757_v6, %v1371_v10  ;;  %v1871_v12 = vpop.f32.mrb[15].mxu0  ;;  %v1375_v13 = vadd.f32 %v1369_v8, %v1202_v38  ;;  %v1764_v38 = vld [vmem:[%s2234_s28 + $0x1] ss:$0 sm:$0xff]  ;;  %s2456_s28 = sld [smem:[#allocation15_spill]] (!%p1765_p4) }
 0x9bb   : > { %v1379_v14 = vsel %vm748_vm2, %v1375_v13, 0.0  ;;  %v1376_v15 = vadd.f32 %v1372_v11, %v1203_v39 }
 0x9bc   : > { %1380 = vadd.xlane.f32.xlu0 %v1379_v14 }
 0x9bd   : > { %v1382_v16 = vsel %vm748_vm2, %v1376_v15, 0.0 }
 0x9be   : > { %1383 = vadd.xlane.f32.xlu1 %v1382_v16 }
 0x9bf   : > { %v1968_v47 = vld [vmem:[%s2456_s28] sm:$0xff] (!%p1765_p4)   ;;  %v1969_v49 = vld [vmem:[%s2456_s28 + $0x8] sm:$0xff] (!%p1765_p4)  }
 0x9c0   : > { %1880 = vmatpush3.bf16.msra.mxu1 (!%p1765_p4), %v1968_v47 }
 0x9c1   : > { %1881 = vmatprep.subr.bf16.mxu1 (!%p1765_p4), %v2050_v46 }
 0x9c4   : > { %1882 = vmatpush3.bf16.msra.mxu1 (!%p1765_p4), %v1969_v49 }
 0xa49   : > { %v1381_v17 = vpop.xlane.xlu0 %1380 }
 0xa4a   : > { %v1385_v18 = vmul.f32 0.03125, %v1381_v17 }
 0xa4b   : > { %v1384_v33 = vpop.xlane.xlu1 %1383 }
 0xa4c   : > { %v1387_v19 = vsub.f32 %v1375_v13, %v1385_v18  ;;  %v1386_v34 = vmul.f32 0.03125, %v1384_v33 }
 0xa4e   : > { %v1388_v20 = vsub.f32 %v1376_v15, %v1386_v34  ;;  %v1389_v21 = vmul.f32 %v1387_v19, %v1387_v19 }
 0xa50   : > { %v1391_v22 = vsel %vm748_vm2, %v1389_v21, 0.0  ;;  %v1390_v23 = vmul.f32 %v1388_v20, %v1388_v20 }
 0xa51   : > { %1392 = vadd.xlane.f32.xlu0 %v1391_v22 }
 0xa52   : > { %v1394_v24 = vsel %vm748_vm2, %v1390_v23, 0.0 }
 0xa53   : > { %1395 = vadd.xlane.f32.xlu1 %v1394_v24 }
 0xade   : > { %v1393_v25 = vpop.xlane.xlu0 %1392 }
 0xadf   : > { %v1397_v26 = vmul.f32 0.03125, %v1393_v25 }
 0xae0   : > { %v1396_v27 = vpop.xlane.xlu1 %1395 }
 0xae1   : > { %v1399_v28 = vadd.f32 1e-12, %v1397_v26  ;;  %v1398_v29 = vmul.f32 0.03125, %v1396_v27 }
 0xae3   : > { %1964 = vrsqrt.f32 %v1399_v28  ;;  %v1400_v30 = vadd.f32 1e-12, %v1398_v29 }
 0xae5   : > { %1966 = vrsqrt.f32 %v1400_v30 }
 0xaed   : > { %v1965_v32 = vpop.eup %1964 }
 0xaee   : > { %v1403_v36 = vmul.f32 %v1965_v32, %v1387_v19 }
 0xaef   : > { %v1967_v37 = vpop.eup %1966 }
 0xaf0   : > { %v1409_v39 = vmul.f32 %v1763_v35, %v1403_v36  ;;  %v1404_v40 = vmul.f32 %v1967_v37, %v1388_v20  ;;  %1422 = sbr.rel (%p1765_p4) target bundleno = 3240 (0xca8), region = 96 }
 0xaf2   : > { %v1415_v41 = vadd.f32 %v1764_v38, %v1409_v39  ;;  %v1410_v42 = vmul.f32 %v1763_v35, %v1404_v40 }
 0xaf4   : > { %1417 = vst.msk [vmem:[#allocation2] sm:$0xff] %vm748_vm2, %v1415_v41  ;;  %v1416_v43 = vadd.f32 %v1764_v38, %v1410_v42 }
 0xaf6   : > { %1418 = vst.msk [vmem:[#allocation2 + $0x8] sm:$0xff] %vm748_vm2, %v1416_v43  ;;  %v1888_v44 = vpack.c.bf16 (!%p1765_p4), %v1416_v43, %v1415_v41 }
 0xaf8   : > { %1889 = vmatpush3.bf16.msra.mxu0 %v1888_v44 }
 0xafb   : > { %1877 = vmatmul.mubr.msk.f32.vlgmr.msra.gmra.mrb[0].mxu0 %vm799_vm3, %v1423_v48 }
 0xbce   : > { %v1493_v50 = vpop.f32.mrb[0].mxu0 }
 0xbcf   : > { %v1497_v51 = vpack.c.bf16 %v1493_v50, %v1493_v50  ;;  %v1878_v52 = vpop.f32.mrb[1].mxu0 }
 0xbd1   : > { %1884 = vmatmul.mubr.msk.bf16.vlgmr.msra.gmra.mrb[0].mxu1 %vm748_vm2, %v1497_v51 }
 0xca4   : > { %v1558_v54 = vpop.f32.mrb[0].mxu1 }
 0xca5   : > { %v1559_v55 = vadd.f32 %v1767_v53, %v1558_v54  ;;  %v1885_v56 = vpop.f32.mrb[1].mxu1 }
 0xca6   : > { %v1561_v57 = vpop.f32.mrb[2].mxu1 }
 0xca7   : > { %1564 = vst.msk [vmem:[#allocation6] sm:$0xff] %vm748_vm2, %v1559_v55  ;;  %v1886_v31 = vpop.f32.mrb[3].mxu1 }
 0xca8 PF: > { %p1904_p6 = scmp.eq.s32.totalorder %s2143_s22, 1  ;;  %s2051_s14 = smov [#allocation6]  }
 0xca9   : > { %s1572_s7 = sshll.u32 %s2051_s14, 4  ;;  %s1573_s7 = int_to_ptr.vmem [resolvable:$true] %s1572_s7 }
 0xcaa   : > { %s1998_s13 = scalar_lea.vmem %s1573_s7, 128  ;;  %p2005_p13 = scmp.lt.s32.totalorder %s1573_s7, %s1573_s7 }
 0xcab   : > { %p1999_p10 = scmp.ne.s32.totalorder %s1573_s7, %s1998_s13  ;;  %p2006_p0 = scmp.lt.s32.totalorder %s1998_s13, %s1998_s13 }
 0xcad   : > { %p2000_p11 = pnand %p1999_p10, %p1904_p6  ;;  %p2007_p1 = por %p2006_p0, %p2005_p13 }
 0xcaf   : > { %p2001_p12 = pneg %p2000_p11 }
 0xcb1   : > { %p2008_p5 = pnand %p2007_p1, %p2001_p12 }
 0xcb3   : > { %2011 = shalt.err (!%p2008_p5)
}
 0xcb4   : > { %s2458_s19 = sld [smem:[#allocation17_spill]] }
 0xcba   : > { %s2012_s0 = scalar_lea.hbm %s2458_s19, 128 }
 0xcbb   : > { %p2013_p7 = scmp.ne.s32.totalorder %s2458_s19, %s2012_s0  ;;  %p2018_p2 = scmp.lt.u32.totalorder %s2012_s0, %s2458_s19 }
 0xcbd   : > { %p2014_p9 = pnand %p2013_p7, %p1904_p6 }
 0xcbf   : > { %p2015_p8 = pneg %p2014_p9 }
 0xcc1   : > { %p2020_p3 = pnand %p2018_p2, %p2015_p8 }
 0xcc3   : > { %2023 = shalt.err (!%p2020_p3)
}
 0xcc4   : > { %1895 = dma.vmem_to_hbm [thread:$0]  (%p1904_p6), %s1573_s7, 128, %s2458_s19, [#allocation5]  }
 0xcc5   : > { %2033 = dma.done.wait (%p1904_p6), [#allocation5], 128  }
 0xcc6   : > { %2035 = vsyncadd (%p1904_p6), [#allocation5], 4294967168 }
 0xcc7 PF: > { %s2459_s15 = sld [smem:[#allocation9_spill]] }
 0xccd   : > { %s28_s21 = sadd.s32 1, %s2459_s15  }
 0xcce   : > { %p25_p4 = scmp.ge.s32.totalorder %s28_s21, 4  }
 0xcd0   :  { %27 = sbr.rel (!%p25_p4) target bundleno = 11 (0xb), region = 151 }
 0xcd7   :  { %1585 = vsyncpa [#allocation4], 1 }
 0xcd8   :  { %1587 = vsyncpa [#allocation4 + $0x1], 1 }
 0xcd9   :  { %1588 = vsyncpa [#allocation5], 1 }
 0xcda   :  { %1590 = vsyncpa [#allocation5 + $0x1], 1 }

</bundles_post_ra>
